<compile_context>
chip_gen: v6e
topology: v6e:2x2x1
jax: 0.10.0
libtpu: 0.0.40
codegen_flags: <defaults>
</compile_context>

<pallas_src>
import math
import functools

import jax
import jax.numpy as jnp
import numpy as np
from jax.experimental import pallas as pl
from jax.experimental.pallas import tpu as pltpu


def crf_loss_kernel(feats_ref, w_ref, b_ref, rbig_ref, rsel_ref,
                    tgt_ref, mask_ref, rmask_ref, loss_ref,
                    s_ref, part_ref, tg_ref,
                    *, end_lane, batch_real, unroll):
    c = pl.program_id(0)
    num_chunks = pl.num_programs(0)
    rows, TT = s_ref.shape
    Bp = part_ref.shape[0]
    Lt = rows // Bp

    # One fused hidden2tag matmul for the whole chunk (bf16 in, f32 out).
    s_ref[...] = (jnp.dot(feats_ref[...], w_ref[...],
                          preferred_element_type=jnp.float32) + b_ref[...])

    @pl.when(c == 0)
    def _init():
        tg_ref[...] = jnp.zeros_like(tg_ref)
        # Partition init (broadcast form): scores[0][:, start_tag, :] replicated
        # over the "to" axis of the flat layout.  Done ONCE, off the hot loop.
        part_ref[...] = jnp.dot(s_ref[pl.ds(0, Bp), :], rsel_ref[...],
                                preferred_element_type=jnp.float32)

    # Gold-path energy for the whole chunk: vectorizes over all Lt*Bp rows and
    # does not touch the carried partition, so it overlaps with the recursion.
    col_tt = jax.lax.broadcasted_iota(jnp.int32, (rows, TT), 1)
    one_hot = (col_tt == tgt_ref[...]).astype(jnp.float32)
    tg_ref[...] += jnp.sum(s_ref[...] * one_hot * mask_ref[...], keepdims=True)

    rbig = rbig_ref[...]   # (TT, TT): rbig[i*T+j, k] = 1  iff  j == k // T

    def step(t, part_b):                                   # part_b: (Bp, TT)
        row0 = pl.multiple_of(t * Bp, 8)
        s_t = s_ref[pl.ds(row0, Bp), :]                    # (Bp, TT)
        rm_t = rmask_ref[pl.ds(row0, Bp), :]               # (Bp, 1)

        cur = s_t + part_b                                  # broadcast-free add
        mrow = jnp.max(cur, axis=1, keepdims=True)          # (Bp, 1)
        ex = jnp.exp(cur - mrow)
        # Single selector matmul: group-sum over "from" AND re-broadcast over
        # the next step's "to" axis in one shot.
        gs_b = jnp.dot(ex, rbig, preferred_element_type=jnp.float32)   # (Bp, TT)
        cur_b = jnp.log(gs_b) + mrow
        return jnp.where(rm_t > 0.5, cur_b, part_b)

    part_b = jax.lax.fori_loop(0, Lt, step, part_ref[...], unroll=unroll)
    part_ref[...] = part_b

    @pl.when(c == num_chunks - 1)
    def _final():
        col = jax.lax.broadcasted_iota(jnp.int32, (Bp, TT), 1)
        row = jax.lax.broadcasted_iota(jnp.int32, (Bp, TT), 0)
        sel = jnp.logical_and(col == end_lane, row < batch_real)
        pe = jnp.sum(jnp.where(sel, part_b, 0.0), keepdims=True)   # (1, 1)
        loss_ref[...] = (pe - tg_ref[...]) / jnp.float32(batch_real)


def crf_forward(feats, target, mask, W, b, *, tagset_size, start_tag, end_tag,
                seq_chunk=128):
    L, B, H = feats.shape
    T = tagset_size
    TT = T * T

    # Pad batch to a sublane multiple (aligned per-timestep slices of the chunk
    # slab); pad seq_len to a chunk multiple (padded steps carry mask==0).
    Bp = max(8, ((B + 7) // 8) * 8)
    Lt = int(max(1, min(seq_chunk, L)))
    Lp = ((L + Lt - 1) // Lt) * Lt
    num_chunks = Lp // Lt

    feats_p = jnp.pad(feats.astype(jnp.bfloat16),
                      ((0, Lp - L), (0, Bp - B), (0, 0)))
    feats2d = feats_p.reshape(Lp * Bp, H)

    tgt_p = jnp.pad(target.astype(jnp.int32), ((0, Lp - L), (0, Bp - B)))
    tgt_flat = tgt_p.reshape(Lp * Bp, 1)

    msk_p = jnp.pad(mask.astype(jnp.float32), ((0, Lp - L), (0, Bp - B)))
    mask_flat = msk_p.reshape(Lp * Bp, 1)
    # Recursion mask: identical to mask except the global t=0 row is zeroed, so
    # the in-loop update naturally keeps the hoisted init at the first step.
    rmask_flat = msk_p.at[0, :].set(0.0).reshape(Lp * Bp, 1)

    # Tiny constant selector matrices (resident in VMEM for the whole grid).
    # Flat layout k = from*T + to.
    m_idx = np.arange(TT)
    k_idx = np.arange(TT)
    rbig = jnp.asarray(((m_idx[:, None] % T) == (k_idx[None, :] // T))
                       .astype(np.float32))                                # (TT, TT)
    rsel = jnp.asarray((m_idx[:, None] == (start_tag * T + k_idx[None, :] // T))
                       .astype(np.float32))                                # (TT, TT)

    w_bf = jnp.asarray(W, jnp.bfloat16)
    b2 = jnp.asarray(b, jnp.float32).reshape(1, TT)

    unroll = max(1, min(Lt, 8))
    kernel = functools.partial(crf_loss_kernel, end_lane=end_tag * T,
                               batch_real=B, unroll=unroll)

    # VMEM budget (lane-padded): score slab + double-buffered feats chunk.
    lane = 128
    slab_bytes = Lt * Bp * max(TT, lane) * 4
    feats_db_bytes = 2 * Lt * Bp * max(H, lane) * 2
    vmem_limit = int(min(max(32 << 20, slab_bytes + feats_db_bytes + (4 << 20)),
                         96 << 20))

    cost = pl.CostEstimate(
        flops=int(2 * Lp * Bp * H * TT + 2 * Lp * Bp * TT * TT),
        transcendentals=int(2 * Lp * Bp * TT),
        bytes_accessed=int(feats2d.size * 2 + tgt_flat.size * 4
                           + 2 * mask_flat.size * 4 + w_bf.size * 2
                           + 2 * TT * TT * 4 + TT * 4 + 4))

    out = pl.pallas_call(
        kernel,
        out_shape=jax.ShapeDtypeStruct((1, 1), jnp.float32),
        grid_spec=pltpu.PrefetchScalarGridSpec(
            num_scalar_prefetch=0,
            grid=(num_chunks,),
            in_specs=[
                pl.BlockSpec((Lt * Bp, H), lambda c: (c, 0)),     # feats chunk (bf16)
                pl.BlockSpec((H, TT), lambda c: (0, 0)),          # W (resident, bf16)
                pl.BlockSpec((1, TT), lambda c: (0, 0)),          # bias (resident)
                pl.BlockSpec((TT, TT), lambda c: (0, 0)),         # rbig (resident)
                pl.BlockSpec((TT, TT), lambda c: (0, 0)),         # rsel (resident)
                pl.BlockSpec((Lt * Bp, 1), lambda c: (c, 0)),     # target chunk
                pl.BlockSpec((Lt * Bp, 1), lambda c: (c, 0)),     # mask chunk (gold)
                pl.BlockSpec((Lt * Bp, 1), lambda c: (c, 0)),     # mask chunk (recursion)
            ],
            out_specs=pl.BlockSpec((1, 1), lambda c: (0, 0)),
            scratch_shapes=[
                pltpu.VMEM((Lt * Bp, TT), jnp.float32),  # chunk score slab
                pltpu.VMEM((Bp, TT), jnp.float32),       # partition (broadcast form, carried)
                pltpu.VMEM((1, 1), jnp.float32),         # gold-energy accumulator (carried)
            ],
        ),
        compiler_params=pltpu.CompilerParams(
            # NOTE: must stay 'arbitrary' — partition/gold scratch are carried
            # across grid steps.  (Parallelism would have to come from a
            # separate batch-tile axis with per-core scratch.)
            dimension_semantics=("arbitrary",),
            vmem_limit_bytes=vmem_limit),
        cost_estimate=cost,
    )(feats2d, w_bf, b2, rbig, rsel, tgt_flat, mask_flat, rmask_flat)
    return out[0, 0]


def crf_forward_ref(feats, target, mask, W, b, *, tagset_size, start_tag, end_tag):
    # Pure-JAX reference mirroring the PyTorch CRF.forward / get_loss.
    L, B, H = feats.shape
    T = tagset_size
    scores = (feats.reshape(L * B, H) @ W + b).reshape(L, B, T, T)
    flat = scores.reshape(L, B, T * T)
    tg = jnp.take_along_axis(flat, target.reshape(L, B, 1), axis=2)[..., 0]
    tg_energy = jnp.sum(tg * mask)
    partition = scores[0, :, start_tag, :]
    for idx in range(1, L):
        cur = scores[idx] + partition[:, :, None]
        cur_part = jax.scipy.special.logsumexp(cur, axis=1)
        mi = mask[idx][:, None] > 0.5
        partition = jnp.where(mi, cur_part, partition)
    return (jnp.sum(partition[:, end_tag]) - tg_energy) / B


if __name__ == "__main__":
    L, B, H = 8, 2, 32
    T = 6                      # tagset_size (includes special start / end tags)
    start_tag, end_tag = T - 2, T - 1

    key = jax.random.PRNGKey(0)
    k1, k2, k3 = jax.random.split(key, 3)

    # deterministic param init matching utils.init_linear: uniform(-bound, bound), zero bias
    bound = math.sqrt(6.0 / (T * T + H))
    W = jax.random.uniform(k1, (H, T * T), jnp.float32, -bound, bound)
    b = jnp.zeros((T * T,), jnp.float32)

    feats = jax.random.normal(k2, (L, B, H), jnp.float32)
    target = jax.random.randint(k3, (L, B), 0, T * T, jnp.int32)
    lengths = jnp.array([L, 5], jnp.int32)
    mask = (jnp.arange(L)[:, None] < lengths[None, :]).astype(jnp.float32)

    loss_ref = crf_forward_ref(feats, target, mask, W, b,
                               tagset_size=T, start_tag=start_tag, end_tag=end_tag)

    # chunk=3 exercises the multi-chunk partition carry AND the seq-padding
    # path; chunk=8 (== L) exercises the single-chunk path.
    for chunk in (3, 8):
        loss = crf_forward(feats, target, mask, W, b,
                           tagset_size=T, start_tag=start_tag, end_tag=end_tag,
                           seq_chunk=chunk)
        loss = jax.block_until_ready(loss)
        # bf16 hidden2tag operands -> slightly looser tolerance than pure f32.
        np.testing.assert_allclose(np.asarray(loss), np.asarray(loss_ref),
                                   rtol=2e-2, atol=2e-2)
    print("KERNEL_OK")
</pallas_src>

<mosaic_0001>
module attributes {stable_mosaic.version = 11 : i64} {
  func.func @crf_loss_kernel(%arg0: i32, %arg1: memref<24x32xbf16, #tpu.memory_space<vmem>>, %arg2: memref<32x36xbf16, #tpu.memory_space<vmem>>, %arg3: memref<1x36xf32, #tpu.memory_space<vmem>>, %arg4: memref<36x36xf32, #tpu.memory_space<vmem>>, %arg5: memref<36x36xf32, #tpu.memory_space<vmem>>, %arg6: memref<24x1xi32, #tpu.memory_space<vmem>>, %arg7: memref<24x1xf32, #tpu.memory_space<vmem>>, %arg8: memref<24x1xf32, #tpu.memory_space<vmem>>, %arg9: memref<1x1xf32, #tpu.memory_space<vmem>>, %arg10: memref<24x36xf32, #tpu.memory_space<vmem>>, %arg11: memref<8x36xf32, #tpu.memory_space<vmem>>, %arg12: memref<1x1xf32, #tpu.memory_space<vmem>>) attributes {dimension_semantics = [#tpu.dimension_semantics<arbitrary>], iteration_bounds = array<i64: 3>, scalar_prefetch = 0 : i64, scratch_operands = 3 : i64, tpu.core_type = #tpu.core_type<tc>, window_params = [{transform_indices = @transform_0, window_bounds = array<i64: 24, 32>}, {pipeline_mode = #tpu.pipeline_mode<synchronous>, transform_indices = @transform_1, window_bounds = array<i64: 32, 36>}, {pipeline_mode = #tpu.pipeline_mode<synchronous>, transform_indices = @transform_2, window_bounds = array<i64: 1, 36>}, {pipeline_mode = #tpu.pipeline_mode<synchronous>, transform_indices = @transform_3, window_bounds = array<i64: 36, 36>}, {pipeline_mode = #tpu.pipeline_mode<synchronous>, transform_indices = @transform_4, window_bounds = array<i64: 36, 36>}, {transform_indices = @transform_5, window_bounds = array<i64: 24, 1>}, {transform_indices = @transform_6, window_bounds = array<i64: 24, 1>}, {transform_indices = @transform_7, window_bounds = array<i64: 24, 1>}, {pipeline_mode = #tpu.pipeline_mode<synchronous>, transform_indices = @transform_8, window_bounds = array<i64: 1, 1>}]} {
    %c0 = arith.constant 0 : index
    %c0_0 = arith.constant 0 : index
    %0 = vector.load %arg1[%c0, %c0_0] : memref<24x32xbf16, #tpu.memory_space<vmem>>, vector<24x32xbf16>
    %c0_1 = arith.constant 0 : index
    %c0_2 = arith.constant 0 : index
    %1 = vector.load %arg2[%c0_1, %c0_2] : memref<32x36xbf16, #tpu.memory_space<vmem>>, vector<32x36xbf16>
    %cst = arith.constant dense<0.000000e+00> : vector<24x36xf32>
    %2 = tpu.matmul %0, %1, %cst {dimension_numbers = #tpu.dot_dimension_numbers<[1], [0], [0], [1], [0, 0, 1, 1], [], []>} : vector<24x32xbf16>, vector<32x36xbf16>, vector<24x36xf32> -> vector<24x36xf32>
    %c0_3 = arith.constant 0 : index
    %c0_4 = arith.constant 0 : index
    %3 = vector.load %arg3[%c0_3, %c0_4] : memref<1x36xf32, #tpu.memory_space<vmem>>, vector<1x36xf32>
    %4 = vector.broadcast %3 : vector<1x36xf32> to vector<24x36xf32>
    %5 = arith.addf %2, %4 : vector<24x36xf32>
    %c0_5 = arith.constant 0 : index
    %c0_6 = arith.constant 0 : index
    %6 = vector.load %arg10[%c0_5, %c0_6] : memref<24x36xf32, #tpu.memory_space<vmem>>, vector<24x36xf32>
    tpu.vector_store %arg10[%c0_5, %c0_6], %5 {strides = array<i32>} : memref<24x36xf32, #tpu.memory_space<vmem>>, vector<24x36xf32>,
    %c0_i32 = arith.constant 0 : i32
    %7 = arith.cmpi eq, %arg0, %c0_i32 : i32
    %8 = arith.extui %7 : i1 to i32
    %c0_i32_7 = arith.constant 0 : i32
    %9 = arith.cmpi ne, %8, %c0_i32_7 : i32
    scf.if %9 {
      %cst_45 = arith.constant 0.000000e+00 : f32
      %98 = vector.broadcast %cst_45 : f32 to vector<1x1xf32>
      %c0_46 = arith.constant 0 : index
      %c0_47 = arith.constant 0 : index
      %99 = vector.load %arg12[%c0_46, %c0_47] : memref<1x1xf32, #tpu.memory_space<vmem>>, vector<1x1xf32>
      tpu.vector_store %arg12[%c0_46, %c0_47], %98 {strides = array<i32>} : memref<1x1xf32, #tpu.memory_space<vmem>>, vector<1x1xf32>,
      %c0_48 = arith.constant 0 : index
      %c0_49 = arith.constant 0 : index
      %100 = vector.load %arg10[%c0_48, %c0_49] : memref<24x36xf32, #tpu.memory_space<vmem>>, vector<8x36xf32>
      %c0_50 = arith.constant 0 : index
      %c0_51 = arith.constant 0 : index
      %101 = vector.load %arg5[%c0_50, %c0_51] : memref<36x36xf32, #tpu.memory_space<vmem>>, vector<36x36xf32>
      %cst_52 = arith.constant dense<0.000000e+00> : vector<8x36xf32>
      %102 = tpu.matmul %100, %101, %cst_52 {dimension_numbers = #tpu.dot_dimension_numbers<[1], [0], [0], [1], [0, 0, 1, 1], [], []>} : vector<8x36xf32>, vector<36x36xf32>, vector<8x36xf32> -> vector<8x36xf32>
      %c0_53 = arith.constant 0 : index
      %c0_54 = arith.constant 0 : index
      %103 = vector.load %arg11[%c0_53, %c0_54] : memref<8x36xf32, #tpu.memory_space<vmem>>, vector<8x36xf32>
      tpu.vector_store %arg11[%c0_53, %c0_54], %102 {strides = array<i32>} : memref<8x36xf32, #tpu.memory_space<vmem>>, vector<8x36xf32>,
    } else {
    }
    %10 = tpu.iota {dimensions = array<i32: 1>} : vector<24x36xi32>
    %c0_8 = arith.constant 0 : index
    %c0_9 = arith.constant 0 : index
    %11 = vector.load %arg6[%c0_8, %c0_9] : memref<24x1xi32, #tpu.memory_space<vmem>>, vector<24x1xi32>
    %12 = vector.broadcast %11 : vector<24x1xi32> to vector<24x36xi32>
    %13 = arith.cmpi eq, %10, %12 : vector<24x36xi32>
    %14 = arith.extui %13 : vector<24x36xi1> to vector<24x36xi32>
    %15 = arith.sitofp %14 : vector<24x36xi32> to vector<24x36xf32>
    %c0_10 = arith.constant 0 : index
    %c0_11 = arith.constant 0 : index
    %16 = vector.load %arg12[%c0_10, %c0_11] : memref<1x1xf32, #tpu.memory_space<vmem>>, vector<1x1xf32>
    %c0_12 = arith.constant 0 : index
    %c0_13 = arith.constant 0 : index
    %17 = vector.load %arg10[%c0_12, %c0_13] : memref<24x36xf32, #tpu.memory_space<vmem>>, vector<24x36xf32>
    %18 = arith.mulf %17, %15 : vector<24x36xf32>
    %c0_14 = arith.constant 0 : index
    %c0_15 = arith.constant 0 : index
    %19 = vector.load %arg7[%c0_14, %c0_15] : memref<24x1xf32, #tpu.memory_space<vmem>>, vector<24x1xf32>
    %20 = vector.broadcast %19 : vector<24x1xf32> to vector<24x36xf32>
    %21 = arith.mulf %18, %20 : vector<24x36xf32>
    %22 = vector.shape_cast %21 : vector<24x36xf32> to vector<1x24x36xf32>
    %cst_16 = arith.constant dense<0.000000e+00> : vector<1xf32>
    %23 = vector.multi_reduction <add>, %22, %cst_16 [1, 2] : vector<1x24x36xf32> to vector<1xf32>
    %24 = vector.shape_cast %23 : vector<1xf32> to vector<1x1x1xf32>
    %25 = vector.extract %24[0, 0, 0] : f32 from vector<1x1x1xf32>
    %26 = vector.broadcast %25 : f32 to vector<1x1xf32>
    %27 = arith.addf %16, %26 : vector<1x1xf32>
    %c0_17 = arith.constant 0 : index
    %c0_18 = arith.constant 0 : index
    %28 = vector.load %arg12[%c0_17, %c0_18] : memref<1x1xf32, #tpu.memory_space<vmem>>, vector<1x1xf32>
    tpu.vector_store %arg12[%c0_17, %c0_18], %27 {strides = array<i32>} : memref<1x1xf32, #tpu.memory_space<vmem>>, vector<1x1xf32>,
    %c0_19 = arith.constant 0 : index
    %c0_20 = arith.constant 0 : index
    %29 = vector.load %arg4[%c0_19, %c0_20] : memref<36x36xf32, #tpu.memory_space<vmem>>, vector<36x36xf32>
    %c0_21 = arith.constant 0 : index
    %c0_22 = arith.constant 0 : index
    %30 = vector.load %arg11[%c0_21, %c0_22] : memref<8x36xf32, #tpu.memory_space<vmem>>, vector<8x36xf32>
    %c0_i32_23 = arith.constant 0 : i32
    %c8_i32 = arith.constant 8 : i32
    %31 = arith.muli %c0_i32_23, %c8_i32 : i32
    %32 = tpu.assume_multiple %31, 8 : i32
    %33 = arith.index_cast %32 : i32 to index
    %c0_24 = arith.constant 0 : index
    %34 = vector.load %arg10[%33, %c0_24] : memref<24x36xf32, #tpu.memory_space<vmem>>, vector<8x36xf32>
    %35 = arith.index_cast %32 : i32 to index
    %c0_25 = arith.constant 0 : index
    %36 = vector.load %arg8[%35, %c0_25] : memref<24x1xf32, #tpu.memory_space<vmem>>, vector<8x1xf32>
    %37 = arith.addf %34, %30 : vector<8x36xf32>
    %cst_26 = arith.constant dense<0xFF800000> : vector<8xf32>
    %38 = vector.multi_reduction <maximumf>, %37, %cst_26 [1] : vector<8x36xf32> to vector<8xf32>
    %39 = vector.shape_cast %38 : vector<8xf32> to vector<8x1xf32>
    %40 = vector.broadcast %39 : vector<8x1xf32> to vector<8x36xf32>
    %41 = arith.subf %37, %40 : vector<8x36xf32>
    %42 = math.exp %41 : vector<8x36xf32>
    %cst_27 = arith.constant dense<0.000000e+00> : vector<8x36xf32>
    %43 = tpu.matmul %42, %29, %cst_27 {dimension_numbers = #tpu.dot_dimension_numbers<[1], [0], [0], [1], [0, 0, 1, 1], [], []>} : vector<8x36xf32>, vector<36x36xf32>, vector<8x36xf32> -> vector<8x36xf32>
    %44 = math.log %43 : vector<8x36xf32>
    %45 = vector.broadcast %39 : vector<8x1xf32> to vector<8x36xf32>
    %46 = arith.addf %44, %45 : vector<8x36xf32>
    %cst_28 = arith.constant 5.000000e-01 : f32
    %47 = vector.broadcast %cst_28 : f32 to vector<8x1xf32>
    %48 = arith.cmpf ogt, %36, %47 : vector<8x1xf32>
    %49 = vector.shape_cast %48 : vector<8x1xi1> to vector<8x1xi1>
    %50 = vector.broadcast %49 : vector<8x1xi1> to vector<8x36xi1>
    %51 = arith.select %50, %46, %30 : vector<8x36xi1>, vector<8x36xf32>
    %c1_i32 = arith.constant 1 : i32
    %c8_i32_29 = arith.constant 8 : i32
    %52 = arith.muli %c1_i32, %c8_i32_29 : i32
    %53 = tpu.assume_multiple %52, 8 : i32
    %54 = arith.index_cast %53 : i32 to index
    %c0_30 = arith.constant 0 : index
    %55 = vector.load %arg10[%54, %c0_30] : memref<24x36xf32, #tpu.memory_space<vmem>>, vector<8x36xf32>
    %56 = arith.index_cast %53 : i32 to index
    %c0_31 = arith.constant 0 : index
    %57 = vector.load %arg8[%56, %c0_31] : memref<24x1xf32, #tpu.memory_space<vmem>>, vector<8x1xf32>
    %58 = arith.addf %55, %51 : vector<8x36xf32>
    %cst_32 = arith.constant dense<0xFF800000> : vector<8xf32>
    %59 = vector.multi_reduction <maximumf>, %58, %cst_32 [1] : vector<8x36xf32> to vector<8xf32>
    %60 = vector.shape_cast %59 : vector<8xf32> to vector<8x1xf32>
    %61 = vector.broadcast %60 : vector<8x1xf32> to vector<8x36xf32>
    %62 = arith.subf %58, %61 : vector<8x36xf32>
    %63 = math.exp %62 : vector<8x36xf32>
    %cst_33 = arith.constant dense<0.000000e+00> : vector<8x36xf32>
    %64 = tpu.matmul %63, %29, %cst_33 {dimension_numbers = #tpu.dot_dimension_numbers<[1], [0], [0], [1], [0, 0, 1, 1], [], []>} : vector<8x36xf32>, vector<36x36xf32>, vector<8x36xf32> -> vector<8x36xf32>
    %65 = math.log %64 : vector<8x36xf32>
    %66 = vector.broadcast %60 : vector<8x1xf32> to vector<8x36xf32>
    %67 = arith.addf %65, %66 : vector<8x36xf32>
    %cst_34 = arith.constant 5.000000e-01 : f32
    %68 = vector.broadcast %cst_34 : f32 to vector<8x1xf32>
    %69 = arith.cmpf ogt, %57, %68 : vector<8x1xf32>
    %70 = vector.shape_cast %69 : vector<8x1xi1> to vector<8x1xi1>
    %71 = vector.broadcast %70 : vector<8x1xi1> to vector<8x36xi1>
    %72 = arith.select %71, %67, %51 : vector<8x36xi1>, vector<8x36xf32>
    %c2_i32 = arith.constant 2 : i32
    %c8_i32_35 = arith.constant 8 : i32
    %73 = arith.muli %c2_i32, %c8_i32_35 : i32
    %74 = tpu.assume_multiple %73, 8 : i32
    %75 = arith.index_cast %74 : i32 to index
    %c0_36 = arith.constant 0 : index
    %76 = vector.load %arg10[%75, %c0_36] : memref<24x36xf32, #tpu.memory_space<vmem>>, vector<8x36xf32>
    %77 = arith.index_cast %74 : i32 to index
    %c0_37 = arith.constant 0 : index
    %78 = vector.load %arg8[%77, %c0_37] : memref<24x1xf32, #tpu.memory_space<vmem>>, vector<8x1xf32>
    %79 = arith.addf %76, %72 : vector<8x36xf32>
    %cst_38 = arith.constant dense<0xFF800000> : vector<8xf32>
    %80 = vector.multi_reduction <maximumf>, %79, %cst_38 [1] : vector<8x36xf32> to vector<8xf32>
    %81 = vector.shape_cast %80 : vector<8xf32> to vector<8x1xf32>
    %82 = vector.broadcast %81 : vector<8x1xf32> to vector<8x36xf32>
    %83 = arith.subf %79, %82 : vector<8x36xf32>
    %84 = math.exp %83 : vector<8x36xf32>
    %cst_39 = arith.constant dense<0.000000e+00> : vector<8x36xf32>
    %85 = tpu.matmul %84, %29, %cst_39 {dimension_numbers = #tpu.dot_dimension_numbers<[1], [0], [0], [1], [0, 0, 1, 1], [], []>} : vector<8x36xf32>, vector<36x36xf32>, vector<8x36xf32> -> vector<8x36xf32>
    %86 = math.log %85 : vector<8x36xf32>
    %87 = vector.broadcast %81 : vector<8x1xf32> to vector<8x36xf32>
    %88 = arith.addf %86, %87 : vector<8x36xf32>
    %cst_40 = arith.constant 5.000000e-01 : f32
    %89 = vector.broadcast %cst_40 : f32 to vector<8x1xf32>
    %90 = arith.cmpf ogt, %78, %89 : vector<8x1xf32>
    %91 = vector.shape_cast %90 : vector<8x1xi1> to vector<8x1xi1>
    %92 = vector.broadcast %91 : vector<8x1xi1> to vector<8x36xi1>
    %93 = arith.select %92, %88, %72 : vector<8x36xi1>, vector<8x36xf32>
    %c3_i32 = arith.constant 3 : i32
    %c0_41 = arith.constant 0 : index
    %c0_42 = arith.constant 0 : index
    %94 = vector.load %arg11[%c0_41, %c0_42] : memref<8x36xf32, #tpu.memory_space<vmem>>, vector<8x36xf32>
    tpu.vector_store %arg11[%c0_41, %c0_42], %93 {strides = array<i32>} : memref<8x36xf32, #tpu.memory_space<vmem>>, vector<8x36xf32>,
    %c2_i32_43 = arith.constant 2 : i32
    %95 = arith.cmpi eq, %arg0, %c2_i32_43 : i32
    %96 = arith.extui %95 : i1 to i32
    %c0_i32_44 = arith.constant 0 : i32
    %97 = arith.cmpi ne, %96, %c0_i32_44 : i32
    scf.if %97 {
      %98 = tpu.iota {dimensions = array<i32: 1>} : vector<8x36xi32>
      %99 = tpu.iota {dimensions = array<i32: 0>} : vector<8x36xi32>
      %c30_i32 = arith.constant 30 : i32
      %100 = vector.broadcast %c30_i32 : i32 to vector<8x36xi32>
      %101 = arith.cmpi eq, %98, %100 : vector<8x36xi32>
      %c2_i32_45 = arith.constant 2 : i32
      %102 = vector.broadcast %c2_i32_45 : i32 to vector<8x36xi32>
      %103 = arith.cmpi slt, %99, %102 : vector<8x36xi32>
      %104 = arith.andi %101, %103 : vector<8x36xi1>
      %cst_46 = arith.constant 0.000000e+00 : f32
      %105 = vector.broadcast %cst_46 : f32 to vector<8x36xf32>
      %106 = arith.select %104, %93, %105 : vector<8x36xi1>, vector<8x36xf32>
      %107 = vector.shape_cast %106 : vector<8x36xf32> to vector<1x8x36xf32>
      %cst_47 = arith.constant dense<0.000000e+00> : vector<1xf32>
      %108 = vector.multi_reduction <add>, %107, %cst_47 [1, 2] : vector<1x8x36xf32> to vector<1xf32>
      %109 = vector.shape_cast %108 : vector<1xf32> to vector<1x1x1xf32>
      %110 = vector.extract %109[0, 0, 0] : f32 from vector<1x1x1xf32>
      %111 = vector.broadcast %110 : f32 to vector<1x1xf32>
      %c0_48 = arith.constant 0 : index
      %c0_49 = arith.constant 0 : index
      %112 = vector.load %arg12[%c0_48, %c0_49] : memref<1x1xf32, #tpu.memory_space<vmem>>, vector<1x1xf32>
      %113 = arith.subf %111, %112 : vector<1x1xf32>
      %cst_50 = arith.constant 2.000000e+00 : f32
      %114 = vector.broadcast %cst_50 : f32 to vector<1x1xf32>
      %115 = arith.divf %113, %114 : vector<1x1xf32>
      %c0_51 = arith.constant 0 : index
      %c0_52 = arith.constant 0 : index
      %116 = vector.load %arg9[%c0_51, %c0_52] : memref<1x1xf32, #tpu.memory_space<vmem>>, vector<1x1xf32>
      tpu.vector_store %arg9[%c0_51, %c0_52], %115 {strides = array<i32>} : memref<1x1xf32, #tpu.memory_space<vmem>>, vector<1x1xf32>,
    } else {
    }
    return
  }
  func.func @transform_0(%arg0: i32) -> (i32, i32) {
    %c0_i32 = arith.constant 0 : i32
    %c0_i32_0 = arith.constant 0 : i32
    return %arg0, %c0_i32 : i32, i32
  }
  func.func @transform_1(%arg0: i32) -> (i32, i32) {
    %c0_i32 = arith.constant 0 : i32
    %c0_i32_0 = arith.constant 0 : i32
    %c0_i32_1 = arith.constant 0 : i32
    return %c0_i32, %c0_i32_0 : i32, i32
  }
  func.func @transform_2(%arg0: i32) -> (i32, i32) {
    %c0_i32 = arith.constant 0 : i32
    %c0_i32_0 = arith.constant 0 : i32
    %c0_i32_1 = arith.constant 0 : i32
    return %c0_i32, %c0_i32_0 : i32, i32
  }
  func.func @transform_3(%arg0: i32) -> (i32, i32) {
    %c0_i32 = arith.constant 0 : i32
    %c0_i32_0 = arith.constant 0 : i32
    %c0_i32_1 = arith.constant 0 : i32
    return %c0_i32, %c0_i32_0 : i32, i32
  }
  func.func @transform_4(%arg0: i32) -> (i32, i32) {
    %c0_i32 = arith.constant 0 : i32
    %c0_i32_0 = arith.constant 0 : i32
    %c0_i32_1 = arith.constant 0 : i32
    return %c0_i32, %c0_i32_0 : i32, i32
  }
  func.func @transform_5(%arg0: i32) -> (i32, i32) {
    %c0_i32 = arith.constant 0 : i32
    %c0_i32_0 = arith.constant 0 : i32
    return %arg0, %c0_i32 : i32, i32
  }
  func.func @transform_6(%arg0: i32) -> (i32, i32) {
    %c0_i32 = arith.constant 0 : i32
    %c0_i32_0 = arith.constant 0 : i32
    return %arg0, %c0_i32 : i32, i32
  }
  func.func @transform_7(%arg0: i32) -> (i32, i32) {
    %c0_i32 = arith.constant 0 : i32
    %c0_i32_0 = arith.constant 0 : i32
    return %arg0, %c0_i32 : i32, i32
  }
  func.func @transform_8(%arg0: i32) -> (i32, i32) {
    %c0_i32 = arith.constant 0 : i32
    %c0_i32_0 = arith.constant 0 : i32
    %c0_i32_1 = arith.constant 0 : i32
    return %c0_i32, %c0_i32_0 : i32, i32
  }
}

</mosaic_0001>

<bundles_post_ra>
// kernel: tpu_custom_call.1
= control target key start
LH: loop header
LB: loop body
LE: loop exit
PB: predicated region body
PF: predicated region fallthrough
CT: control target
= control target key end

     0   :  { %13 = vsyncpa [#allocation6], 0  ;;  %s1263_s27 = smov 0   ;;  %s1419_s0 = inlined_call_operand.vmem [shape: bf16[72,32], index: 0, kind: input, shape index: {}]   ;;  %s1420_s1 = inlined_call_operand.vmem [shape: bf16[32,36], index: 1, kind: input, shape index: {}]   ;;  %s1421_s2 = inlined_call_operand.vmem [shape: f32[1,36], index: 2, kind: input, shape index: {}]   ;;  %s1422_s3 = inlined_call_operand.vmem [shape: f32[36,36], index: 3, kind: input, shape index: {}]   ;;  %s1423_s4 = inlined_call_operand.vmem [shape: f32[36,36], index: 4, kind: input, shape index: {}]   ;;  %s1424_s5 = inlined_call_operand.vmem [shape: s32[72,1], index: 5, kind: input, shape index: {}]   ;;  %s1425_s6 = inlined_call_operand.vmem [shape: f32[72,1], index: 6, kind: input, shape index: {}]   ;;  %s1426_s7 = inlined_call_operand.vmem [shape: f32[72,1], index: 7, kind: input, shape index: {}]   ;;  %s1427_s8 = inlined_call_operand.hbm [shape: f32[1,1], index: 8, kind: output, shape index: {}]  }
   0x1 LB: > { %s1269_s28 = sadd.s32 4294967295, %s1210_s27   ;;  %p1015_p0 = scmp.ge.s32.totalorder %s1210_s27, 1  ;;  %s1210_s27 = sphi %s1263_s27, %s19_s27  }
   0x2   : > { %p292_p1 = scmp.lt.s32.totalorder %s1210_s27, 4 }
   0x4   : > { %p293_p2 = pnand %p1015_p0, %p292_p1 }
   0x5   : > { %s336_s9 = smul.u32 (!%p293_p2), 3, %s1269_s28  ;;  %p1027_p4 = scmp.ne.s32.totalorder (!%p293_p2), %s1269_s28, 0 }
   0x6   : > { %296 = sbr.rel (%p293_p2) target bundleno = 1775 (0x6ef), region = 52 }
   0x7   : > { %p337_p3 = scmp.lt.s32.totalorder (!%p293_p2), %s336_s9, 8 }
   0xb   : > { %v1158_v0 = vld [vmem:[%s1420_s1 + $0x8] sm:$0xff]   ;;  %v1159_v1 = vld [vmem:[%s1420_s1] sm:$0xff]   ;;  %s1429_s9 = smov (!%p337_p3, %s336_s9), 8  ;;  %vm395_vm0 = vcmask 261120   ;;  %vm450_vm1 = vcmask 293888  }
   0xc   : > { %1074 = vmatprep.subr.bf16.mxu0 %v1158_v0  ;;  %s1016_s12 = sshll.u32 %s1429_s9, 2  ;;  %s1017_s13 = sshll.u32 %s1429_s9, 3  ;;  %v1020_v4 = vld [vmem:[%s1421_s2] ss:$0 sm:$0xff] }
   0xd   : > { %1075 = vmatpush3.bf16.msra.mxu0 %v1158_v0  ;;  %s340_s16 = scalar_lea.vmem %s1419_s0, %s1016_s12  ;;  %s1286_s19 = scalar_lea.vmem %s1424_s5, %s1017_s13 }
   0xe   : > { %1076 = vmatprep.subr.bf16.mxu0 %v1159_v1  ;;  %s1291_s22 = scalar_lea.vmem %s1425_s6, %s1017_s13  ;;  %s1296_s25 = scalar_lea.vmem %s1426_s7, %s1017_s13  ;;  %v1160_v2 = vld [vmem:[%s340_s16] sm:$0xff]   ;;  %v1161_v3 = vld [vmem:[%s340_s16 + $0x8] ss:$0 sps:$4 sm:$0xff]  }
   0xf   : > { %1078 = vmatprep.mubr.msk.bf16.mxu0 %vm395_vm0, %v1160_v2 }
  0x11   : > { %1077 = vmatpush3.bf16.msra.mxu0 %v1159_v1 }
  0x14   : > { %1079 = vmatmul.mubr.msk.bf16.vlgmr.msra.gmra.mxu0 %vm395_vm0, %v1161_v3 }
  0xd4   : > { %v1080_v5 = vpop.f32.mrf.mxu0 }
  0xd5   : > { %v445_v6 = vadd.f32 %v1080_v5, %v1020_v4 }
  0xd6   : > { %v436_v7 = vpop.f32.mrf.mxu0 }
  0xd7   : > { %453 = vst.msk [vmem:[#allocation2 + $0x10] sm:$0xff] %vm450_vm1, %v445_v6  ;;  %v437_v8 = vadd.f32 %v1020_v4, %v436_v7 }
  0xd8   : > { %v1081_v9 = vpop.f32.mrf.mxu0 }
  0xd9   : > { %451 = vst.msk [vmem:[#allocation2] sm:$0xff] %vm450_vm1, %v437_v8  ;;  %457 = sbr.rel (%p1027_p4) target bundleno = 428 (0x1ac), region = 56 }
  0xda   : > { %v439_v10 = vpop.f32.mrf.mxu0 }
  0xdb   : > { %v440_v11 = vadd.f32 %v1020_v4, %v439_v10 }
  0xdd   : > { %452 = vst.msk [vmem:[#allocation2 + $0x8] sm:$0xff] %vm450_vm1, %v440_v11 }
  0xde   : > { %vm458_vm2 = vcmask 0   ;;  %v465_v12 = vld [vmem:[%s1423_s4 + $0x20] sm:$0xf]  ;;  %vm469_vm3 = vcmask 1043456   ;;  %v1212_v13 = vmov 0.0   ;;  %v464_v14 = vld [vmem:[%s1423_s4 + $0x18] sm:$0xff] }
  0xdf   : > { %459 = vst.msk [vmem:[#allocation4] sm:$0x1] %vm458_vm2, %v1212_v13  ;;  %1082 = vmatprep.subr.mxu0 %v1212_v13  ;;  %vm1213_vm4 = vmmov 0   ;;  %v463_v15 = vld [vmem:[%s1423_s4 + $0x10] sm:$0xff]  ;;  %v462_v16 = vld [vmem:[%s1423_s4 + $0x8] sm:$0xff]  ;;  %v461_v17 = vld [vmem:[%s1423_s4] sm:$0xff] }
  0xe0   : > { %1083 = vmatpush3.msk.msra.mxu0 %vm469_vm3, %v465_v12  ;;  %1092 = vmatprep.mubr.msk.f32.mxu0 %vm1213_vm4, %v1212_v13  ;;  %v460_v18 = vld [vmem:[#allocation2] sm:$0xff] }
  0xe1   : > { %1084 = vmatprep.subr.mxu0 %v1212_v13 }
  0xe2   : > { %1085 = vmatpush3.msra.mxu0 %v464_v14 }
  0xe3   : > { %1086 = vmatprep.subr.mxu0 %v1212_v13 }
  0xe4   : > { %1087 = vmatpush3.msra.mxu0 %v463_v15 }
  0xe5   : > { %1088 = vmatprep.subr.mxu0 %v1212_v13 }
  0xe6   : > { %1089 = vmatpush3.msra.mxu0 %v462_v16 }
  0xe7   : > { %1090 = vmatprep.subr.mxu0 %v1212_v13 }
  0xe8   : > { %1091 = vmatpush3.msra.mxu0 %v461_v17 }
  0xe9   : > { %1093 = vmatmul.mubr.msk.f32.vlgmr.msra.gmra.mxu0 %vm450_vm1, %v460_v18 }
 0x1a9   : > { %v539_v19 = vpop.f32.mrf.mxu0 }
 0x1aa   : > { %543 = vst.msk [vmem:[#allocation3] sm:$0xff] %vm450_vm1, %v539_v19 }
 0x1ab   : > { %v1094_v20 = vpop.f32.mrf.mxu0 }
 0x1ac PF: > { %v617_v25 = vld [vmem:[%s1422_s3 + $0x20] sm:$0xf]  ;;  %vm631_vm5 = vcmask 1043456   ;;  %v1214_v26 = vmov 0.0   ;;  %v616_v27 = vld [vmem:[%s1422_s3 + $0x18] sm:$0xff]  ;;  %vm1215_vm6 = vmmov 0   ;;  %v544_v10 = vlaneseq }
 0x1ad   : > { %1095 = vmatprep.subr.mxu0 %v1214_v26  ;;  %1108 = vmatprep.subr.mxu1 %v1214_v26  ;;  %v615_v28 = vld [vmem:[%s1422_s3 + $0x10] sm:$0xff]  ;;  %v614_v29 = vld [vmem:[%s1422_s3 + $0x8] sm:$0xff]  ;;  %v613_v30 = vld [vmem:[%s1422_s3] sm:$0xff]  ;;  %v1216_v32 = vmov 0   ;;  %vm611_vm15 = vcmask 0   ;;  %p1041_p5 = scmp.ne.s32.totalorder %s1269_s28, 2 }
 0x1ae   : > { %v1324_v22 = vld [vmem:[#allocation2] sm:$0xff]  ;;  %1096 = vmatpush3.msk.msra.mxu0 %vm631_vm5, %v617_v25  ;;  %1105 = vmatprep.mubr.msk.f32.mxu0 %vm1215_vm6, %v1214_v26  ;;  %v547_v35 = vld [vmem:[%s1286_s19 + $0x8] sm:$0xff]  ;;  %v548_v36 = vld [vmem:[%s1286_s19 + $0x10] sm:$0xff]  ;;  %v545_v11 = vand.u32 127, %v544_v10 }
 0x1af   : > { %1097 = vmatprep.subr.mxu0 %v1214_v26  ;;  %1109 = vmatpush3.msk.msra.mxu1 %vm631_vm5, %v617_v25  ;;  %v620_v31 = vld [vmem:[%s1296_s25] sm:$0xff]  ;;  %v575_v37 = vld [vmem:[%s1291_s22 + $0x8] sm:$0xff]  ;;  %v576_v38 = vld [vmem:[%s1291_s22 + $0x10] sm:$0xff] }
 0x1b0   : > { %1098 = vmatpush3.msra.mxu0 %v616_v27  ;;  %1110 = vmatprep.subr.mxu1 %v1214_v26  ;;  %vm708_vm7 = vcmp.gt.f32.partialorder %v620_v31, 0.5  ;;  %v546_v34 = vld [vmem:[%s1286_s19] sm:$0xff]  ;;  %v1035_v53 = vld [vmem:[%s1296_s25 + $0x8] sm:$0xff]  ;;  %v570_v1 = vld [vmem:[#allocation2 + $0x10] sm:$0xff] }
 0x1b1   : > { %v1322_v21 = vld [vmem:[#allocation3] sm:$0xff]  ;;  %1099 = vmatprep.subr.mxu0 %v1214_v26  ;;  %1111 = vmatpush3.msra.mxu1 %v616_v27  ;;  %v709_v33 = vsel %vm708_vm7, 1, %v1216_v32  ;;  %vm802_vm9 = vcmp.gt.f32.partialorder %v1035_v53, 0.5  ;;  %v1038_v5 = vld [vmem:[%s1296_s25 + $0x10] sm:$0xff]  ;;  %v574_v6 = vld [vmem:[%s1291_s22] sm:$0xff] }
 0x1b2   : > { %v621_v23 = vadd.f32 %v1324_v22, %v1322_v21  ;;  %1100 = vmatpush3.msra.mxu0 %v615_v28  ;;  %1112 = vmatprep.subr.mxu1 %v1214_v26  ;;  %v569_v49 = vld [vmem:[#allocation2 + $0x8] sm:$0xff]  ;;  %v803_v54 = vsel %vm802_vm9, 1, %v1216_v32  ;;  %vm896_vm11 = vcmp.gt.f32.partialorder %v1038_v5, 0.5 }
 0x1b3   : > { %1101 = vmatprep.subr.mxu0 %v1214_v26  ;;  %1113 = vmatpush3.msra.mxu1 %v615_v28  ;;  %v897_v7 = vsel %vm896_vm11, 1, %v1216_v32 }
 0x1b4   : > { %v622_v24 = vsel %vm450_vm1, %v621_v23, -inf  ;;  %1102 = vmatpush3.msra.mxu0 %v614_v29  ;;  %1114 = vmatprep.subr.mxu1 %v1214_v26 }
 0x1b5   : > { %623 = vmax.xlane.f32.xlu0 %v622_v24  ;;  %1103 = vmatprep.subr.mxu0 %v1214_v26 }
 0x1b6   : > { %1115 = vmatpush3.msra.mxu1 %v614_v29  ;;  %1104 = vmatpush3.msra.mxu0 %v613_v30 }
 0x1b7   : > { %1116 = vmatprep.subr.mxu1 %v1214_v26  ;;  %1118 = vmatprep.mubr.msk.f32.mxu1 %vm1215_vm6, %v1214_v26 }
 0x1b8   : > { %1117 = vmatpush3.msra.mxu1 %v613_v30  ;;  %1121 = vmatprep.subr.mxu0 %v1214_v26 }
 0x1b9   : > { %1162 = vset.pattern.permute.xlu0 %v1216_v32  ;;  %1163 = vset.pattern.permute.xlu1 %v1216_v32 }
 0x1cb   : > { %711 = vperm.xlu0 %1162, %v709_v33  }
 0x1cf   : > { %550 = vperm.xlu0 %1162, %v546_v34  }
 0x1d3   : > { %553 = vperm.xlu0 %1162, %v547_v35  }
 0x1d7   : > { %556 = vperm.xlu0 %1162, %v548_v36  }
 0x1db   : > { %584 = vperm.xlu0 %1162, %v575_v37  }
 0x1df   : > { %589 = vperm.xlu0 %1162, %v576_v38  }
 0x23e   : > { %v624_v39 = vpop.xlane.xlu0 %623 }
 0x23f   : > { %v625_v40 = vsub.f32 %v621_v23, %v624_v39 }
 0x241   : > { %v626_v41 = vmul.f32 1.442695, %v625_v40 }
 0x243   : > { %1164 = vpow2.f32 %v626_v41  ;;  %v567_v41 = vld [vmem:[#allocation4] sm:$0x1] }
 0x246   : > { %v712_v46 = vpop.permute.xlu0 %711 }
 0x247   : > { %vm713_vm8 = vcmp.eq.s32.totalorder %v712_v46, 1 }
 0x24a   : > { %v551_v8 = vpop.permute.xlu0 %550 }
 0x24b   : > { %vm558_vm14 = vcmp.eq.s32.totalorder %v545_v11, %v551_v8 }
 0x24c   : > { %v1030_v17 = vsel %vm558_vm14, 1.0, %v1214_v26 }
 0x24e   : > { %v554_v9 = vpop.permute.xlu0 %553 }
 0x24f   : > { %vm559_vm12 = vcmp.eq.s32.totalorder %v545_v11, %v554_v9 }
 0x250   : > { %v1165_v42 = vpop.eup %1164  ;;  %v1031_v13 = vsel %vm559_vm12, 1.0, %v1214_v26 }
 0x251   : > { %1106 = vmatmul.mubr.msk.f32.vlgmr.msra.gmra.mxu0 %vm450_vm1, %v1165_v42  ;;  %v572_v16 = vmul.f32 %v1031_v13, %v569_v49 }
 0x252   : > { %1122 = vmatpush3.msk.msra.mxu0 %vm631_vm5, %v617_v25  ;;  %1131 = vmatprep.mubr.msk.f32.mxu0 %vm1215_vm6, %v1214_v26  ;;  %v557_v12 = vpop.permute.xlu0 %556  ;;  %v571_v25 = vmul.f32 %v1030_v17, %v1324_v22 }
 0x253   : > { %1123 = vmatprep.subr.mxu0 %v1214_v26  ;;  %vm560_vm13 = vcmp.eq.s32.totalorder %v545_v11, %v557_v12 }
 0x254   : > { %1124 = vmatpush3.msra.mxu0 %v616_v27  ;;  %v1032_v15 = vsel %vm560_vm13, 1.0, %v1214_v26 }
 0x255   : > { %1125 = vmatprep.subr.mxu0 %v1214_v26  ;;  %v573_v19 = vmul.f32 %v1032_v15, %v570_v1 }
 0x256   : > { %1126 = vmatpush3.msra.mxu0 %v615_v28  ;;  %v585_v14 = vpop.permute.xlu0 %584 }
 0x257   : > { %1127 = vmatprep.subr.mxu0 %v1214_v26  ;;  %v593_v23 = vmul.f32 %v585_v14, %v572_v16 }
 0x258   : > { %1128 = vmatpush3.msra.mxu0 %v614_v29 }
 0x259   : > { %1129 = vmatprep.subr.mxu0 %v1214_v26 }
 0x25a   : > { %1130 = vmatpush3.msra.mxu0 %v613_v30  ;;  %v596_v30 = vsel %vm450_vm1, %v593_v23, 0.0 }
 0x311   : > { %v701_v43 = vpop.f32.mrf.mxu0 }
 0x312   : > { %1166 = vlog2.f32 %v701_v43 }
 0x313   : > { %v1107_v44 = vpop.f32.mrf.mxu0 }
 0x31f   : > { %v1167_v45 = vpop.eup %1166 }
 0x320   : > { %v706_v47 = vmul.f32 0.6931472, %v1167_v45 }
 0x322   : > { %v707_v48 = vadd.f32 %v706_v47, %v624_v39 }
 0x324   : > { %v714_v50 = vsel %vm713_vm8, %v707_v48, %v1322_v21  ;;  %v590_v21 = vpop.permute.xlu0 %589 }
 0x325   : > { %v719_v51 = vadd.f32 %v714_v50, %v569_v49  ;;  %v594_v28 = vmul.f32 %v590_v21, %v573_v19 }
 0x327   : > { %v720_v52 = vsel %vm450_vm1, %v719_v51, -inf  ;;  %v598_v33 = vsel %vm450_vm1, %v594_v28, 0.0 }
 0x328   : > { %721 = vmax.xlane.f32.xlu1 %v720_v52 }
 0x339   : > { %805 = vperm.xlu1 %1163, %v803_v54  }
 0x3b1   : > { %v722_v55 = vpop.xlane.xlu1 %721 }
 0x3b2   : > { %v723_v56 = vsub.f32 %v719_v51, %v722_v55 }
 0x3b4   : > { %v724_v57 = vmul.f32 1.442695, %v723_v56 }
 0x3b5   : > { %v806_v61 = vpop.permute.xlu1 %805 }
 0x3b6   : > { %1168 = vpow2.f32 %v724_v57  ;;  %vm807_vm10 = vcmp.eq.s32.totalorder %v806_v61, 1 }
 0x3c3   : > { %v1169_v58 = vpop.eup %1168 }
 0x3c4   : > { %1119 = vmatmul.mubr.msk.f32.vlgmr.msra.gmra.mxu1 %vm450_vm1, %v1169_v58 }
 0x484   : > { %v795_v59 = vpop.f32.mrf.mxu1 }
 0x485   : > { %1170 = vlog2.f32 %v795_v59 }
 0x486   : > { %v1120_v60 = vpop.f32.mrf.mxu1 }
 0x492   : > { %v1171_v62 = vpop.eup %1170 }
 0x493   : > { %v800_v63 = vmul.f32 0.6931472, %v1171_v62 }
 0x495   : > { %v801_v0 = vadd.f32 %v800_v63, %v722_v55 }
 0x497   : > { %v1383_v2 = vsel %vm807_vm10, %v801_v0, %v714_v50 }
 0x498   : > { %v813_v3 = vadd.f32 %v1383_v2, %v570_v1 }
 0x49a   : > { %v814_v4 = vsel %vm450_vm1, %v813_v3, -inf }
 0x49b   : > { %815 = vmax.xlane.f32.xlu1 %v814_v4 }
 0x4ac   : > { %579 = vperm.xlu1 %1163, %v574_v6  }
 0x4b0   : > { %899 = vperm.xlu1 %1163, %v897_v7  }
 0x524   : > { %v816_v18 = vpop.xlane.xlu1 %815 }
 0x525   : > { %v817_v20 = vsub.f32 %v813_v3, %v816_v18 }
 0x527   : > { %v818_v24 = vmul.f32 1.442695, %v817_v20 }
 0x528   : > { %v580_v27 = vpop.permute.xlu1 %579 }
 0x529   : > { %1172 = vpow2.f32 %v818_v24  ;;  %v592_v29 = vmul.f32 %v580_v27, %v571_v25 }
 0x52b   : > { %v595_v31 = vsel %vm450_vm1, %v592_v29, 0.0 }
 0x52c   : > { %v597_v32 = vadd.f32 %v596_v30, %v595_v31  ;;  %v900_v47 = vpop.permute.xlu1 %899 }
 0x52d   : > { %vm901_vm0 = vcmp.eq.s32.totalorder %v900_v47, 1 }
 0x52e   : > { %v599_v26 = vadd.f32 %v598_v33, %v597_v32 }
 0x530   : > { %600 = vadd.xlane.f32.xlu0 %v599_v26 }
 0x536   : > { %v1173_v34 = vpop.eup %1172 }
 0x537   : > { %1132 = vmatmul.mubr.msk.f32.vlgmr.msra.gmra.mxu0 %vm450_vm1, %v1173_v34 }
 0x5b9   : > { %v601_v35 = vpop.xlane.xlu0 %600 }
 0x5ba   : > { %v602_v36 = vrot.slane %v601_v35, 4 }
 0x5bc   : > { %v603_v37 = vadd.f32 %v602_v36, %v601_v35 }
 0x5be   : > { %v604_v22 = vrot.slane %v603_v37, 2 }
 0x5c0   : > { %v605_v38 = vadd.f32 %v604_v22, %v603_v37 }
 0x5c2   : > { %v606_v39 = vrot.slane %v605_v38, 1 }
 0x5c4   : > { %v607_v40 = vadd.f32 %v606_v39, %v605_v38 }
 0x5c6   : > { %1134 = vpush %v607_v40 }
 0x5f7   : > { %s1135_s19 = spop %1134  ;;  %v889_v42 = vpop.f32.mrf.mxu0 }
 0x5f8   : > { %v609_v43 = vstv %s1135_s19  ;;  %1174 = vlog2.f32 %v889_v42 }
 0x5f9   : > { %v610_v44 = vadd.f32 %v609_v43, %v567_v41  ;;  %v1133_v45 = vpop.f32.mrf.mxu0 }
 0x5fb   : > { %612 = vst.msk [vmem:[#allocation4] sm:$0x1] %vm611_vm15, %v610_v44 }
 0x605   : > { %v1175_v46 = vpop.eup %1174 }
 0x606   : > { %v894_v48 = vmul.f32 0.6931472, %v1175_v46 }
 0x607   : > { %907 = sbr.rel (%p1041_p5) target bundleno = 1760 (0x6e0), region = 60 }
 0x608   : > { %v895_v49 = vadd.f32 %v894_v48, %v816_v18 }
 0x60a   : > { %v902_v50 = vsel %vm901_vm0, %v895_v49, %v1383_v2 }
 0x60b   : > { %903 = vst.msk [vmem:[#allocation3] sm:$0xff] %vm450_vm1, %v902_v50 }
 0x60c   : > { %v909_v51 = vshrl.u32 %v544_v10, 7  ;;  %vm910_vm2 = vcmp.eq.s32.totalorder %v545_v11, 30  ;;  %v925_v61 = vld [vmem:[#allocation4] sm:$0x1] }
 0x60e   : > { %vm911_vm3 = vcmp.lt.s32.totalorder %v909_v51, 2 }
 0x60f   : > { %vm912_vm4 = vmand %vm910_vm2, %vm911_vm3 }
 0x610   : > { %v913_v52 = vsel %vm912_vm4, %v902_v50, 0.0 }
 0x611   : > { %v914_v53 = vsel %vm450_vm1, %v913_v52, 0.0 }
 0x612   : > { %915 = vadd.xlane.f32.xlu0 %v914_v53 }
 0x69b   : > { %v916_v54 = vpop.xlane.xlu0 %915 }
 0x69c   : > { %v917_v55 = vrot.slane %v916_v54, 4 }
 0x69e   : > { %v918_v56 = vadd.f32 %v917_v55, %v916_v54 }
 0x6a0   : > { %v919_v57 = vrot.slane %v918_v56, 2 }
 0x6a2   : > { %v920_v58 = vadd.f32 %v919_v57, %v918_v56 }
 0x6a4   : > { %v921_v59 = vrot.slane %v920_v58, 1 }
 0x6a6   : > { %v922_v60 = vadd.f32 %v921_v59, %v920_v58 }
 0x6a8   : > { %1136 = vpush %v922_v60 }
 0x6d9   : > { %s1137_s22 = spop %1136 }
 0x6da   : > { %v924_v62 = vstv %s1137_s22 }
 0x6db   : > { %v926_v63 = vsub.f32 %v924_v62, %v925_v61 }
 0x6dd   : > { %v928_v0 = vmul.f32 0.5, %v926_v63 }
 0x6df   : > { %929 = vst.msk [vmem:[#allocation5] sm:$0x1] %vm611_vm15, %v928_v0 }
 0x6e0 PF: > { %p1142_p6 = scmp.eq.s32.totalorder %s1269_s28, 2  ;;  %s1217_s25 = smov [#allocation5]  }
 0x6e1   : > { %s937_s11 = sshll.u32 %s1217_s25, 4  ;;  %s938_s11 = int_to_ptr.vmem [resolvable:$true] %s937_s11 }
 0x6e2   : > { %s1176_s12 = scalar_lea.vmem %s938_s11, 16  ;;  %s1182_s13 = scalar_lea.vmem %s938_s11, 32 }
 0x6e3   : > { %p1177_p7 = scmp.ne.s32.totalorder %s938_s11, %s1176_s12  ;;  %p1183_p10 = scmp.lt.s32.totalorder %s938_s11, %s938_s11 }
 0x6e4   : > { %p1184_p11 = scmp.lt.s32.totalorder %s1182_s13, %s1176_s12 }
 0x6e5   : > { %p1178_p8 = pnand %p1177_p7, %p1142_p6 }
 0x6e6   : > { %p1185_p12 = por %p1184_p11, %p1183_p10 }
 0x6e7   : > { %p1179_p9 = pneg %p1178_p8 }
 0x6e9   : > { %p1186_p13 = pnand %p1185_p12, %p1179_p9 }
 0x6eb   : > { %1189 = shalt.err (!%p1186_p13)
}
 0x6ec   : > { %1139 = dma.vmem_to_hbm [thread:$0]  (%p1142_p6), %s938_s11, 16, %s1427_s8, [#allocation6]  }
 0x6ed   : > { %1205 = dma.done.wait (%p1142_p6), [#allocation6], 16  }
 0x6ee   : > { %1207 = vsyncadd (%p1142_p6), [#allocation6], 4294967280 }
 0x6ef PF: > { %s19_s27 = sadd.s32 1, %s1210_s27  }
 0x6f0   : > { %p16_p0 = scmp.ge.s32.totalorder %s19_s27, 5  }
 0x6f2   :  { %18 = sbr.rel (!%p16_p0) target bundleno = 1 (0x1), region = 100 }
 0x6f7   :  { %950 = vsyncpa [#allocation6], 1 }
 0x6f8   :  { %952 = vsyncpa [#allocation6 + $0x1], 1 }

</bundles_post_ra>
